<compile_context>
chip_gen: v6e
topology: v6e:2x2x1
jax: 0.10.0
libtpu: 0.0.40
codegen_flags: <defaults>
</compile_context>

<pallas_src>
import jax
import jax.numpy as jnp
from jax.experimental import pallas as pl
from jax.experimental.pallas import tpu as pltpu


def _sage_gcn_kernel(src_ref, nei_ref, w_src_ref, w_agg_ref, out_ref):
    # Two small MXU matmuls with f32 accumulation (memory-bound; MXU has slack).
    embed_src = jnp.dot(
        src_ref[...], w_src_ref[...], preferred_element_type=jnp.float32
    )
    embed_nei = jnp.dot(
        nei_ref[...], w_agg_ref[...], preferred_element_type=jnp.float32
    )
    # Concatenate in registers (lane shift on the XLU — free slot here),
    # ReLU on the f32 accumulator, cast only at the final store.
    cat = jnp.concatenate([embed_src, embed_nei], axis=-1)
    out_ref[...] = jnp.maximum(cat, 0.0).astype(out_ref.dtype)


def sage_gcn_forward(
    src_features,
    nei_features,
    w_src,
    w_agg,
    *,
    row_tile=1024,
    out_dtype=jnp.bfloat16,
):
    n, src_dim = src_features.shape
    n2, nei_dim = nei_features.shape
    assert n == n2
    out_dim = w_src.shape[1]
    assert w_src.shape == (src_dim, out_dim)
    assert w_agg.shape == (nei_dim, out_dim)
    out_cols = 2 * out_dim

    # Row tile: sublane-aligned, capped so there are >= 2 row blocks when
    # possible (keeps both v7x TensorCores busy via the "parallel" axis).
    half_rows = pl.cdiv(n, 2)
    tile_n = max(8, min(row_tile, pl.cdiv(half_rows, 8) * 8))
    grid = (pl.cdiv(n, tile_n),)

    in_bytes = src_features.dtype.itemsize
    cost = pl.CostEstimate(
        flops=2 * n * (src_dim + nei_dim) * out_dim,
        transcendentals=0,
        bytes_accessed=(
            n * (src_dim + nei_dim) * in_bytes
            + (src_dim + nei_dim) * out_dim * w_src.dtype.itemsize
            + n * out_cols * jnp.dtype(out_dtype).itemsize
        ),
    )

    return pl.pallas_call(
        _sage_gcn_kernel,
        out_shape=jax.ShapeDtypeStruct((n, out_cols), out_dtype),
        grid_spec=pltpu.PrefetchScalarGridSpec(
            num_scalar_prefetch=0,
            grid=grid,
            in_specs=[
                # Row blocks of src / nei stream through; last dim = full K.
                pl.BlockSpec((tile_n, src_dim), lambda i: (i, 0)),
                pl.BlockSpec((tile_n, nei_dim), lambda i: (i, 0)),
                # Tiny weights stay VMEM-resident (constant index map).
                pl.BlockSpec((src_dim, out_dim), lambda i: (0, 0)),
                pl.BlockSpec((nei_dim, out_dim), lambda i: (0, 0)),
            ],
            out_specs=pl.BlockSpec((tile_n, out_cols), lambda i: (i, 0)),
        ),
        compiler_params=pltpu.CompilerParams(
            # Row blocks are independent -> megacore sharding on v7x.
            dimension_semantics=("parallel",),
            # Far above the ~1 MiB footprint; safe on v7x's 64 MiB VMEM too.
            vmem_limit_bytes=32 * 1024 * 1024,
        ),
        cost_estimate=cost,
    )(src_features, nei_features, w_src, w_agg)


def kaiming_uniform(key, shape):
    # Mimics torch.nn.init.kaiming_uniform_ (default args) on an (in, out)
    # weight as stored by this module: fan_in = shape[1], bound = sqrt(6/fan_in).
    fan_in = shape[1]
    bound = (6.0 / fan_in) ** 0.5
    return jax.random.uniform(
        key, shape, dtype=jnp.float32, minval=-bound, maxval=bound
    )


if __name__ == "__main__":
    # Small shapes consistent with the module (node dim batched).
    N = 200          # non-multiple of the tile -> exercises the clipped block
    SRC_DIM = 32
    NEI_DIM = 32
    OUT_DIM = 32

    key = jax.random.PRNGKey(0)
    k_src, k_nei, k_wsrc, k_wagg = jax.random.split(key, 4)

    src_features = jax.random.normal(k_src, (N, SRC_DIM), dtype=jnp.float32)
    nei_features = jax.random.normal(k_nei, (N, NEI_DIM), dtype=jnp.float32)
    w_src = kaiming_uniform(k_wsrc, (SRC_DIM, OUT_DIM))   # self.weight
    w_agg = kaiming_uniform(k_wagg, (NEI_DIM, OUT_DIM))   # aggregator.weight

    out = sage_gcn_forward(src_features, nei_features, w_src, w_agg)
    out = jax.block_until_ready(out)

    # Pure-JAX reference (eval-mode semantics), f32 end-to-end.  The kernel's
    # matmuls accumulate in f32; the only rounding is the final bf16 store.
    ref = jnp.maximum(
        jnp.concatenate(
            [src_features @ w_src, nei_features @ w_agg], axis=-1
        ),
        0.0,
    )

    assert out.shape == (N, 2 * OUT_DIM)
    assert out.dtype == jnp.bfloat16
    assert jnp.allclose(out.astype(jnp.float32), ref, atol=3e-2, rtol=3e-2)

    print("KERNEL_OK")
</pallas_src>

<mosaic_0001>
module attributes {stable_mosaic.version = 11 : i64} {
  func.func @_sage_gcn_kernel(%arg0: i32, %arg1: memref<104x32xf32, #tpu.memory_space<vmem>>, %arg2: memref<104x32xf32, #tpu.memory_space<vmem>>, %arg3: memref<32x32xf32, #tpu.memory_space<vmem>>, %arg4: memref<32x32xf32, #tpu.memory_space<vmem>>, %arg5: memref<104x64xbf16, #tpu.memory_space<vmem>>) attributes {dimension_semantics = [#tpu.dimension_semantics<parallel>], iteration_bounds = array<i64: 2>, scalar_prefetch = 0 : i64, scratch_operands = 0 : i64, tpu.core_type = #tpu.core_type<tc>, window_params = [{transform_indices = @transform_0, window_bounds = array<i64: 104, 32>}, {transform_indices = @transform_1, window_bounds = array<i64: 104, 32>}, {pipeline_mode = #tpu.pipeline_mode<synchronous>, transform_indices = @transform_2, window_bounds = array<i64: 32, 32>}, {pipeline_mode = #tpu.pipeline_mode<synchronous>, transform_indices = @transform_3, window_bounds = array<i64: 32, 32>}, {transform_indices = @transform_4, window_bounds = array<i64: 104, 64>}]} {
    %c0 = arith.constant 0 : index
    %c0_0 = arith.constant 0 : index
    %0 = vector.load %arg1[%c0, %c0_0] : memref<104x32xf32, #tpu.memory_space<vmem>>, vector<104x32xf32>
    %c0_1 = arith.constant 0 : index
    %c0_2 = arith.constant 0 : index
    %1 = vector.load %arg3[%c0_1, %c0_2] : memref<32x32xf32, #tpu.memory_space<vmem>>, vector<32x32xf32>
    %cst = arith.constant dense<0.000000e+00> : vector<104x32xf32>
    %2 = tpu.matmul %0, %1, %cst {dimension_numbers = #tpu.dot_dimension_numbers<[1], [0], [0], [1], [0, 0, 1, 1], [], []>} : vector<104x32xf32>, vector<32x32xf32>, vector<104x32xf32> -> vector<104x32xf32>
    %c0_3 = arith.constant 0 : index
    %c0_4 = arith.constant 0 : index
    %3 = vector.load %arg2[%c0_3, %c0_4] : memref<104x32xf32, #tpu.memory_space<vmem>>, vector<104x32xf32>
    %c0_5 = arith.constant 0 : index
    %c0_6 = arith.constant 0 : index
    %4 = vector.load %arg4[%c0_5, %c0_6] : memref<32x32xf32, #tpu.memory_space<vmem>>, vector<32x32xf32>
    %cst_7 = arith.constant dense<0.000000e+00> : vector<104x32xf32>
    %5 = tpu.matmul %3, %4, %cst_7 {dimension_numbers = #tpu.dot_dimension_numbers<[1], [0], [0], [1], [0, 0, 1, 1], [], []>} : vector<104x32xf32>, vector<32x32xf32>, vector<104x32xf32> -> vector<104x32xf32>
    %6 = tpu.concatenate %2, %5 in 1 : vector<104x32xf32>, vector<104x32xf32> -> vector<104x64xf32>
    %cst_8 = arith.constant 0.000000e+00 : f32
    %7 = vector.broadcast %cst_8 : f32 to vector<104x64xf32>
    %8 = arith.maximumf %6, %7 : vector<104x64xf32>
    %9 = arith.truncf %8 : vector<104x64xf32> to vector<104x64xbf16>
    %c0_9 = arith.constant 0 : index
    %c0_10 = arith.constant 0 : index
    %10 = vector.load %arg5[%c0_9, %c0_10] : memref<104x64xbf16, #tpu.memory_space<vmem>>, vector<104x64xbf16>
    tpu.vector_store %arg5[%c0_9, %c0_10], %9 {strides = array<i32>} : memref<104x64xbf16, #tpu.memory_space<vmem>>, vector<104x64xbf16>,
    return
  }
  func.func @transform_0(%arg0: i32) -> (i32, i32) {
    %c0_i32 = arith.constant 0 : i32
    %c0_i32_0 = arith.constant 0 : i32
    return %arg0, %c0_i32 : i32, i32
  }
  func.func @transform_1(%arg0: i32) -> (i32, i32) {
    %c0_i32 = arith.constant 0 : i32
    %c0_i32_0 = arith.constant 0 : i32
    return %arg0, %c0_i32 : i32, i32
  }
  func.func @transform_2(%arg0: i32) -> (i32, i32) {
    %c0_i32 = arith.constant 0 : i32
    %c0_i32_0 = arith.constant 0 : i32
    %c0_i32_1 = arith.constant 0 : i32
    return %c0_i32, %c0_i32_0 : i32, i32
  }
  func.func @transform_3(%arg0: i32) -> (i32, i32) {
    %c0_i32 = arith.constant 0 : i32
    %c0_i32_0 = arith.constant 0 : i32
    %c0_i32_1 = arith.constant 0 : i32
    return %c0_i32, %c0_i32_0 : i32, i32
  }
  func.func @transform_4(%arg0: i32) -> (i32, i32) {
    %c0_i32 = arith.constant 0 : i32
    %c0_i32_0 = arith.constant 0 : i32
    return %arg0, %c0_i32 : i32, i32
  }
}

</mosaic_0001>

<bundles_post_ra>
// kernel: tpu_custom_call.1
= control target key start
LH: loop header
LB: loop body
LE: loop exit
PB: predicated region body
PF: predicated region fallthrough
CT: control target
= control target key end

     0   :  { %s1499_s15 = smov 0   ;;  %s1501_s16 = smov 0   ;;  %s1844_s0 = inlined_call_operand.vmem [shape: f32[200,32], index: 0, kind: input, shape index: {}]   ;;  %s1845_s1 = inlined_call_operand.vmem [shape: f32[200,32], index: 1, kind: input, shape index: {}]   ;;  %s1846_s2 = inlined_call_operand.vmem [shape: f32[32,32], index: 2, kind: input, shape index: {}]   ;;  %s1847_s3 = inlined_call_operand.vmem [shape: f32[32,32], index: 3, kind: input, shape index: {}]   ;;  %s1848_s4 = inlined_call_operand.vmem [shape: bf16[200,64], index: 4, kind: output, shape index: {}]  }
   0x1   :  { %s1503_s17 = smov 0  }
   0x2 LB: > { %s1512_s18 = sadd.s32 4294967295, %s1437_s17   ;;  %s1514_s19 = sadd.s32 1, %s1437_s17   ;;  %s1437_s17 = sphi %s1503_s17, %s1855_s17   ;;  %s1433_s16 = sphi %s1501_s16, %s1854_s16   ;;  %s1429_s15 = sphi %s1499_s15, %s1853_s15  }
   0x3   : > { %s112_s20 = ssub.s32 %s1437_s17, %s1514_s19  ;;  %s115_s21 = sadd.s32 1, %s1433_s16 }
   0x4   : > { %p113_p0 = scmp.eq.s32.totalorder %s112_s20, 0  ;;  %p125_p1 = scmp.ne.s32.totalorder %s1433_s16, %s1429_s15 }
   0x5   : > { %p126_p2 = scmp.eq.s32.totalorder %s1512_s18, 1  ;;  %p1060_p3 = scmp.ge.s32.totalorder %s1437_s17, 1 }
   0x6   : > { %s1522_s22 = scalar_select %p113_p0, %s1433_s16, %s115_s21  }
   0x7   : > { %p1524_p4 = por %p126_p2, %p125_p1  ;;  %p190_p5 = scmp.lt.s32.totalorder %s1437_s17, 3 }
   0x9   : > { %p191_p6 = pnand %p1060_p3, %p190_p5 }
   0xa   : > { %s1532_s26 = smul.u32 (!%p191_p6), 13, %s1512_s18  ;;  %s1473_s30 = smov (!%p191_p6), 32  }
   0xb   : > { %194 = sbr.rel (%p191_p6) target bundleno = 450 (0x1c2), region = 36  ;;  %s225_s5 = sand.u32 (!%p191_p6), 1, %s1429_s15  }
   0xc   : > { %p233_p7 = scmp.lt.s32.totalorder (!%p191_p6), %s1532_s26, 24  ;;  %s1256_s6 = smul.u32 (!%p191_p6), 52, %s225_s5 }
   0xe   : > { %s1717_s7 = scalar_lea.vmem (!%p191_p6), [#allocation2], %s1256_s6  }
  0x10   : > { %v464_v0 = vld [vmem:[%s1847_s3 + $0x18] sm:$0xff]  ;;  %v1471_v1 = vmov 0.0   ;;  %v463_v2 = vld [vmem:[%s1847_s3 + $0x10] sm:$0xff]  ;;  %vm1472_vm0 = vmmov 0   ;;  %v462_v5 = vld [vmem:[%s1847_s3 + $0x8] sm:$0xff]  ;;  %s234_s9 = scalar_select %p233_p7, %s1532_s26, 24 }
  0x11   : > { %1209 = vmatprep.subr.mxu1 %v1471_v1  ;;  %1217 = vmatprep.mubr.msk.f32.mxu1 %vm1472_vm0, %v1471_v1  ;;  %v277_v3 = vld [vmem:[%s1846_s2 + $0x18] sm:$0xff]  ;;  %v276_v4 = vld [vmem:[%s1846_s2 + $0x10] sm:$0xff]  ;;  %v275_v6 = vld [vmem:[%s1846_s2 + $0x8] sm:$0xff]  ;;  %vm278_vm1 = vcmask 261120   ;;  %vm765_vm2 = vcmask 519168   ;;  %s787_s15 = ssub.s32 (%p1524_p4), 25, %s1532_s26 }
  0x12   : > { %1210 = vmatpush3.msra.mxu1 %v464_v0  ;;  %1162 = vmatprep.subr.mxu0 %v1471_v1  ;;  %v461_v7 = vld [vmem:[%s1847_s3] sm:$0xff]  ;;  %s1061_s14 = sshll.u32 %s234_s9, 3  ;;  %s1127_s8 = smul.u32 (%p1524_p4), 52, %s1512_s18 }
  0x13   : > { %1211 = vmatprep.subr.mxu1 %v1471_v1  ;;  %1163 = vmatpush3.msra.mxu0 %v277_v3  ;;  %v274_v8 = vld [vmem:[%s1846_s2] sm:$0xff]  ;;  %s1569_s25 = scalar_lea.vmem %s1845_s1, %s1061_s14  ;;  %s1577_s29 = scalar_lea.vmem %s1844_s0, %s1061_s14 }
  0x14   : > { %1212 = vmatpush3.msra.mxu1 %v463_v2  ;;  %1164 = vmatprep.subr.mxu0 %v1471_v1  ;;  %v448_v9 = vld [vmem:[%s1569_s25] sm:$0xff]  ;;  %v449_v10 = vld [vmem:[%s1569_s25 + $0x8] sm:$0xff]  ;;  %v450_v12 = vld [vmem:[%s1569_s25 + $0x10] sm:$0xff]  ;;  %p788_p8 = scmp.lt.s32.totalorder (%p1524_p4), %s787_s15, 13  ;;  %s1774_s11 = scalar_lea.vmem (%p1524_p4), %s1848_s4, %s1127_s8  }
  0x15   : > { %1213 = vmatprep.subr.mxu1 %v1471_v1  ;;  %1165 = vmatpush3.msra.mxu0 %v276_v4  ;;  %v261_v11 = vld [vmem:[%s1577_s29] sm:$0xff]  ;;  %v262_v13 = vld [vmem:[%s1577_s29 + $0x8] sm:$0xff]  ;;  %v451_v14 = vld [vmem:[%s1569_s25 + $0x18] sm:$0xff] }
  0x16   : > { %1214 = vmatpush3.msra.mxu1 %v462_v5  ;;  %1166 = vmatprep.subr.mxu0 %v1471_v1  ;;  %v263_v15 = vld [vmem:[%s1577_s29 + $0x10] sm:$0xff]  ;;  %v452_v16 = vld [vmem:[%s1569_s25 + $0x20] sm:$0xff]  ;;  %v264_v17 = vld [vmem:[%s1577_s29 + $0x18] sm:$0xff] }
  0x17   : > { %1215 = vmatprep.subr.mxu1 %v1471_v1  ;;  %1167 = vmatpush3.msra.mxu0 %v275_v6  ;;  %v453_v18 = vld [vmem:[%s1569_s25 + $0x28] sm:$0xff]  ;;  %v265_v19 = vld [vmem:[%s1577_s29 + $0x20] sm:$0xff]  ;;  %v454_v20 = vld [vmem:[%s1569_s25 + $0x30] sm:$0xff] }
  0x18   : > { %1216 = vmatpush3.msra.mxu1 %v461_v7  ;;  %1168 = vmatprep.subr.mxu0 %v1471_v1  ;;  %v266_v21 = vld [vmem:[%s1577_s29 + $0x28] sm:$0xff]  ;;  %v455_v22 = vld [vmem:[%s1569_s25 + $0x38] sm:$0xff]  ;;  %v267_v23 = vld [vmem:[%s1577_s29 + $0x30] sm:$0xff] }
  0x19   : > { %1218 = vmatmul.mubr.msk.f32.vlgmr.msra.gmra.mxu1 %vm278_vm1, %v448_v9  ;;  %1169 = vmatpush3.msra.mxu0 %v274_v8  ;;  %v456_v24 = vld [vmem:[%s1569_s25 + $0x40] sm:$0xff]  ;;  %v268_v25 = vld [vmem:[%s1577_s29 + $0x38] sm:$0xff]  ;;  %v457_v26 = vld [vmem:[%s1569_s25 + $0x48] sm:$0xff] }
  0x1a   : > { %1220 = vmatprep.mubr.msk.f32.mxu1 %vm1472_vm0, %v1471_v1  ;;  %1170 = vmatprep.mubr.msk.f32.mxu0 %vm1472_vm0, %v1471_v1  ;;  %v269_v27 = vld [vmem:[%s1577_s29 + $0x40] sm:$0xff]  ;;  %v458_v28 = vld [vmem:[%s1569_s25 + $0x50] sm:$0xff]  ;;  %v270_v29 = vld [vmem:[%s1577_s29 + $0x48] sm:$0xff] }
  0x1b   : > { %1171 = vmatmul.mubr.msk.f32.vlgmr.msra.gmra.mxu0 %vm278_vm1, %v261_v11  ;;  %v459_v30 = vld [vmem:[%s1569_s25 + $0x58] sm:$0xff]  ;;  %v271_v31 = vld [vmem:[%s1577_s29 + $0x50] sm:$0xff]  ;;  %v460_v32 = vld [vmem:[%s1569_s25 + $0x60] sm:$0xff] }
  0x1c   : > { %1173 = vmatprep.mubr.msk.f32.mxu0 %vm1472_vm0, %v1471_v1  ;;  %v272_v33 = vld [vmem:[%s1577_s29 + $0x58] sm:$0xff]  ;;  %v273_v34 = vld [vmem:[%s1577_s29 + $0x60] sm:$0xff] }
  0x1d   : > { %1221 = vmatmul.mubr.msk.f32.gmra.mxu1 %vm278_vm1, %v449_v10 }
  0x1e   : > { %1223 = vmatprep.mubr.msk.f32.mxu1 %vm1472_vm0, %v1471_v1 }
  0x1f   : > { %1174 = vmatmul.mubr.msk.f32.gmra.mxu0 %vm278_vm1, %v262_v13 }
  0x20   : > { %1176 = vmatprep.mubr.msk.f32.mxu0 %vm1472_vm0, %v1471_v1 }
  0x21   : > { %1224 = vmatmul.mubr.msk.f32.gmra.mxu1 %vm278_vm1, %v450_v12 }
  0x22   : > { %1226 = vmatprep.mubr.msk.f32.mxu1 %vm1472_vm0, %v1471_v1 }
  0x23   : > { %1177 = vmatmul.mubr.msk.f32.gmra.mxu0 %vm278_vm1, %v263_v15 }
  0x24   : > { %1179 = vmatprep.mubr.msk.f32.mxu0 %vm1472_vm0, %v1471_v1 }
  0x25   : > { %1227 = vmatmul.mubr.msk.f32.gmra.mxu1 %vm278_vm1, %v451_v14 }
  0x26   : > { %1229 = vmatprep.mubr.msk.f32.mxu1 %vm1472_vm0, %v1471_v1 }
  0x27   : > { %1180 = vmatmul.mubr.msk.f32.gmra.mxu0 %vm278_vm1, %v264_v17 }
  0x28   : > { %1182 = vmatprep.mubr.msk.f32.mxu0 %vm1472_vm0, %v1471_v1 }
  0x29   : > { %1230 = vmatmul.mubr.msk.f32.gmra.mxu1 %vm278_vm1, %v452_v16 }
  0x2a   : > { %1232 = vmatprep.mubr.msk.f32.mxu1 %vm1472_vm0, %v1471_v1 }
  0x2b   : > { %1183 = vmatmul.mubr.msk.f32.gmra.mxu0 %vm278_vm1, %v265_v19 }
  0x2c   : > { %1185 = vmatprep.mubr.msk.f32.mxu0 %vm1472_vm0, %v1471_v1 }
  0x2d   : > { %1233 = vmatmul.mubr.msk.f32.gmra.mxu1 %vm278_vm1, %v453_v18 }
  0x2e   : > { %1235 = vmatprep.mubr.msk.f32.mxu1 %vm1472_vm0, %v1471_v1 }
  0x2f   : > { %1186 = vmatmul.mubr.msk.f32.gmra.mxu0 %vm278_vm1, %v266_v21 }
  0x30   : > { %1188 = vmatprep.mubr.msk.f32.mxu0 %vm1472_vm0, %v1471_v1 }
  0x31   : > { %1236 = vmatmul.mubr.msk.f32.gmra.mxu1 %vm278_vm1, %v454_v20 }
  0x32   : > { %1238 = vmatprep.mubr.msk.f32.mxu1 %vm1472_vm0, %v1471_v1 }
  0x33   : > { %1189 = vmatmul.mubr.msk.f32.gmra.mxu0 %vm278_vm1, %v267_v23 }
  0x34   : > { %1191 = vmatprep.mubr.msk.f32.mxu0 %vm1472_vm0, %v1471_v1 }
  0x35   : > { %1239 = vmatmul.mubr.msk.f32.gmra.mxu1 %vm278_vm1, %v455_v22 }
  0x36   : > { %1241 = vmatprep.mubr.msk.f32.mxu1 %vm1472_vm0, %v1471_v1 }
  0x37   : > { %1192 = vmatmul.mubr.msk.f32.gmra.mxu0 %vm278_vm1, %v268_v25 }
  0x38   : > { %1194 = vmatprep.mubr.msk.f32.mxu0 %vm1472_vm0, %v1471_v1 }
  0x39   : > { %1242 = vmatmul.mubr.msk.f32.gmra.mxu1 %vm278_vm1, %v456_v24 }
  0x3a   : > { %1244 = vmatprep.mubr.msk.f32.mxu1 %vm1472_vm0, %v1471_v1 }
  0x3b   : > { %1195 = vmatmul.mubr.msk.f32.gmra.mxu0 %vm278_vm1, %v269_v27 }
  0x3c   : > { %1197 = vmatprep.mubr.msk.f32.mxu0 %vm1472_vm0, %v1471_v1 }
  0x3d   : > { %1245 = vmatmul.mubr.msk.f32.gmra.mxu1 %vm278_vm1, %v457_v26 }
  0x3e   : > { %1247 = vmatprep.mubr.msk.f32.mxu1 %vm1472_vm0, %v1471_v1 }
  0x3f   : > { %1198 = vmatmul.mubr.msk.f32.gmra.mxu0 %vm278_vm1, %v270_v29 }
  0x40   : > { %1200 = vmatprep.mubr.msk.f32.mxu0 %vm1472_vm0, %v1471_v1 }
  0x41   : > { %1248 = vmatmul.mubr.msk.f32.gmra.mxu1 %vm278_vm1, %v458_v28 }
  0x42   : > { %1250 = vmatprep.mubr.msk.f32.mxu1 %vm1472_vm0, %v1471_v1 }
  0x43   : > { %1201 = vmatmul.mubr.msk.f32.gmra.mxu0 %vm278_vm1, %v271_v31 }
  0x44   : > { %1203 = vmatprep.mubr.msk.f32.mxu0 %vm1472_vm0, %v1471_v1 }
  0x45   : > { %1251 = vmatmul.mubr.msk.f32.gmra.mxu1 %vm278_vm1, %v459_v30 }
  0x46   : > { %1253 = vmatprep.mubr.msk.f32.mxu1 %vm1472_vm0, %v1471_v1 }
  0x47   : > { %1204 = vmatmul.mubr.msk.f32.gmra.mxu0 %vm278_vm1, %v272_v33 }
  0x48   : > { %1206 = vmatprep.mubr.msk.f32.mxu0 %vm1472_vm0, %v1471_v1 }
  0x49   : > { %1254 = vmatmul.mubr.msk.f32.gmra.mxu1 %vm278_vm1, %v460_v32 }
  0x4b   : > { %1207 = vmatmul.mubr.msk.f32.gmra.mxu0 %vm278_vm1, %v273_v34 }
  0xd9   : > { %v570_v35 = vpop.f32.mrf.mxu1 }
  0xdb   : > { %v1219_v36 = vpop.f32.mrf.mxu1  ;;  %v1679_v38 = vpop.f32.mrf.mxu0 }
  0xdd   : > { %v575_v37 = vpop.f32.mrf.mxu1  ;;  %v1172_v41 = vpop.f32.mrf.mxu0 }
  0xde   : > { %v1349_v39 = vpack.i.bf16 %v575_v37, %v570_v35 }
  0xdf   : > { %v1222_v40 = vpop.f32.mrf.mxu1  ;;  %v1682_v43 = vpop.f32.mrf.mxu0 }
  0xe0   : > { %1350 = vrot.lane.b32.xlu0 %v1349_v39, %s1473_s30 }
  0xe1   : > { %v580_v42 = vpop.f32.mrf.mxu1  ;;  %v1175_v45 = vpop.f32.mrf.mxu0 }
  0xe3   : > { %v1225_v44 = vpop.f32.mrf.mxu1  ;;  %v1684_v47 = vpop.f32.mrf.mxu0 }
  0xe5   : > { %v585_v46 = vpop.f32.mrf.mxu1  ;;  %v1178_v50 = vpop.f32.mrf.mxu0 }
  0xe6   : > { %v1354_v48 = vpack.i.bf16 %v585_v46, %v580_v42 }
  0xe7   : > { %v1228_v49 = vpop.f32.mrf.mxu1  ;;  %v1687_v52 = vpop.f32.mrf.mxu0 }
  0xe8   : > { %1355 = vrot.lane.b32.xlu0 %v1354_v48, %s1473_s30 }
  0xe9   : > { %v590_v51 = vpop.f32.mrf.mxu1  ;;  %v1181_v54 = vpop.f32.mrf.mxu0 }
  0xeb   : > { %v1231_v53 = vpop.f32.mrf.mxu1  ;;  %v1689_v56 = vpop.f32.mrf.mxu0 }
  0xed   : > { %v595_v55 = vpop.f32.mrf.mxu1  ;;  %v1184_v59 = vpop.f32.mrf.mxu0 }
  0xee   : > { %v1359_v57 = vpack.i.bf16 %v595_v55, %v590_v51 }
  0xef   : > { %v1234_v58 = vpop.f32.mrf.mxu1  ;;  %v1692_v61 = vpop.f32.mrf.mxu0 }
  0xf0   : > { %1360 = vrot.lane.b32.xlu1 %v1359_v57, %s1473_s30 }
  0xf1   : > { %v600_v60 = vpop.f32.mrf.mxu1  ;;  %v1187_v63 = vpop.f32.mrf.mxu0 }
  0xf3   : > { %v1237_v62 = vpop.f32.mrf.mxu1  ;;  %v1694_v1 = vpop.f32.mrf.mxu0 }
  0xf5   : > { %v605_v0 = vpop.f32.mrf.mxu1  ;;  %v1190_v4 = vpop.f32.mrf.mxu0 }
  0xf6   : > { %v1364_v2 = vpack.i.bf16 %v605_v0, %v600_v60 }
  0xf7   : > { %v1240_v3 = vpop.f32.mrf.mxu1  ;;  %v1697_v6 = vpop.f32.mrf.mxu0 }
  0xf8   : > { %1365 = vrot.lane.b32.xlu1 %v1364_v2, %s1473_s30 }
  0xf9   : > { %v610_v5 = vpop.f32.mrf.mxu1  ;;  %v1193_v8 = vpop.f32.mrf.mxu0 }
  0xfb   : > { %v1243_v7 = vpop.f32.mrf.mxu1  ;;  %v1699_v10 = vpop.f32.mrf.mxu0 }
  0xfd   : > { %v615_v9 = vpop.f32.mrf.mxu1  ;;  %v1196_v13 = vpop.f32.mrf.mxu0 }
  0xfe   : > { %v1369_v11 = vpack.i.bf16 %v615_v9, %v610_v5 }
  0xff   : > { %v1246_v12 = vpop.f32.mrf.mxu1  ;;  %v1702_v15 = vpop.f32.mrf.mxu0 }
 0x100   : > { %1370 = vrot.lane.b32.xlu0 %v1369_v11, %s1473_s30 }
 0x101   : > { %v620_v14 = vpop.f32.mrf.mxu1  ;;  %v1199_v17 = vpop.f32.mrf.mxu0 }
 0x103   : > { %v1249_v16 = vpop.f32.mrf.mxu1  ;;  %v1704_v19 = vpop.f32.mrf.mxu0 }
 0x105   : > { %v625_v18 = vpop.f32.mrf.mxu1  ;;  %v1202_v22 = vpop.f32.mrf.mxu0 }
 0x106   : > { %v1374_v20 = vpack.i.bf16 %v625_v18, %v620_v14 }
 0x107   : > { %v1252_v21 = vpop.f32.mrf.mxu1  ;;  %v1707_v24 = vpop.f32.mrf.mxu0 }
 0x108   : > { %1375 = vrot.lane.b32.xlu1 %v1374_v20, %s1473_s30 }
 0x109   : > { %v630_v23 = vpop.f32.mrf.mxu1  ;;  %v1205_v26 = vpop.f32.mrf.mxu0 }
 0x10a   : > { %671 = vrot.lane.b32.xlu0 %v630_v23, %s1473_s30 }
 0x10b   : > { %v1255_v25 = vpop.f32.mrf.mxu1  ;;  %v1710_v27 = vpop.f32.mrf.mxu0 }
 0x10d   : > { %v1208_v28 = vpop.f32.mrf.mxu0 }
 0x152   : > { %v1351_v29 = vpop.permute.xlu0 %1350 }
 0x153   : > { %v1353_v30 = vunpack.i.h.bf16 %v1351_v29  ;;  %v1352_v31 = vunpack.i.l.bf16 %v1351_v29 }
 0x155   : > { %v686_v32 = vsel %vm278_vm1, %v1679_v38, %v1352_v31  ;;  %v687_v33 = vsel %vm278_vm1, %v1682_v43, %v1353_v30 }
 0x156   : > { %v699_v34 = vmax.f32 %v686_v32, 0.0  ;;  %v700_v35 = vmax.f32 %v687_v33, 0.0 }
 0x158   : > { %v1114_v36 = vpack.c.bf16 %v699_v34, %v699_v34  ;;  %v1115_v37 = vpack.c.bf16 %v700_v35, %v700_v35 }
 0x15a   : > { %766 = vst.msk [vmem:[%s1717_s7] sm:$0xf] %vm765_vm2, %v1114_v36  ;;  %767 = vst.msk [vmem:[%s1717_s7 + $0x4] sm:$0xf] %vm765_vm2, %v1115_v37  ;;  %v1356_v39 = vpop.permute.xlu0 %1355 }
 0x15b   : > { %v1358_v38 = vunpack.i.h.bf16 %v1356_v39  ;;  %v1357_v40 = vunpack.i.l.bf16 %v1356_v39 }
 0x15d   : > { %v688_v41 = vsel %vm278_vm1, %v1684_v47, %v1357_v40  ;;  %v689_v42 = vsel %vm278_vm1, %v1687_v52, %v1358_v38 }
 0x15e   : > { %v701_v43 = vmax.f32 %v688_v41, 0.0  ;;  %v702_v44 = vmax.f32 %v689_v42, 0.0 }
 0x160   : > { %v1116_v45 = vpack.c.bf16 %v701_v43, %v701_v43  ;;  %v1117_v46 = vpack.c.bf16 %v702_v44, %v702_v44 }
 0x162   : > { %768 = vst.msk [vmem:[%s1717_s7 + $0x8] sm:$0xf] %vm765_vm2, %v1116_v45  ;;  %769 = vst.msk [vmem:[%s1717_s7 + $0xc] sm:$0xf] %vm765_vm2, %v1117_v46  ;;  %v1361_v48 = vpop.permute.xlu1 %1360 }
 0x163   : > { %v1363_v49 = vunpack.i.h.bf16 %v1361_v48  ;;  %v1362_v50 = vunpack.i.l.bf16 %v1361_v48 }
 0x165   : > { %v690_v51 = vsel %vm278_vm1, %v1689_v56, %v1362_v50  ;;  %v691_v47 = vsel %vm278_vm1, %v1692_v61, %v1363_v49 }
 0x166   : > { %v703_v52 = vmax.f32 %v690_v51, 0.0  ;;  %v704_v53 = vmax.f32 %v691_v47, 0.0 }
 0x168   : > { %v1118_v54 = vpack.c.bf16 %v703_v52, %v703_v52  ;;  %v1119_v55 = vpack.c.bf16 %v704_v53, %v704_v53 }
 0x16a   : > { %770 = vst.msk [vmem:[%s1717_s7 + $0x10] sm:$0xf] %vm765_vm2, %v1118_v54  ;;  %771 = vst.msk [vmem:[%s1717_s7 + $0x14] sm:$0xf] %vm765_vm2, %v1119_v55  ;;  %v1366_v57 = vpop.permute.xlu1 %1365 }
 0x16b   : > { %v1368_v58 = vunpack.i.h.bf16 %v1366_v57  ;;  %v1367_v59 = vunpack.i.l.bf16 %v1366_v57 }
 0x16d   : > { %v692_v60 = vsel %vm278_vm1, %v1694_v1, %v1367_v59  ;;  %v693_v56 = vsel %vm278_vm1, %v1697_v6, %v1368_v58 }
 0x16e   : > { %v705_v61 = vmax.f32 %v692_v60, 0.0  ;;  %v706_v62 = vmax.f32 %v693_v56, 0.0 }
 0x170   : > { %v1120_v63 = vpack.c.bf16 %v705_v61, %v705_v61  ;;  %v1121_v0 = vpack.c.bf16 %v706_v62, %v706_v62 }
 0x172   : > { %772 = vst.msk [vmem:[%s1717_s7 + $0x18] sm:$0xf] %vm765_vm2, %v1120_v63  ;;  %773 = vst.msk [vmem:[%s1717_s7 + $0x1c] sm:$0xf] %vm765_vm2, %v1121_v0  ;;  %v1371_v2 = vpop.permute.xlu0 %1370 }
 0x173   : > { %v1373_v3 = vunpack.i.h.bf16 %v1371_v2  ;;  %v1372_v4 = vunpack.i.l.bf16 %v1371_v2 }
 0x175   : > { %v694_v5 = vsel %vm278_vm1, %v1699_v10, %v1372_v4  ;;  %v695_v1 = vsel %vm278_vm1, %v1702_v15, %v1373_v3 }
 0x176   : > { %v707_v6 = vmax.f32 %v694_v5, 0.0  ;;  %v708_v7 = vmax.f32 %v695_v1, 0.0 }
 0x178   : > { %v1122_v8 = vpack.c.bf16 %v707_v6, %v707_v6  ;;  %v1123_v9 = vpack.c.bf16 %v708_v7, %v708_v7 }
 0x17a   : > { %774 = vst.msk [vmem:[%s1717_s7 + $0x20] sm:$0xf] %vm765_vm2, %v1122_v8  ;;  %775 = vst.msk [vmem:[%s1717_s7 + $0x24] sm:$0xf] %vm765_vm2, %v1123_v9  ;;  %v1376_v11 = vpop.permute.xlu1 %1375 }
 0x17b   : > { %v1378_v12 = vunpack.i.h.bf16 %v1376_v11  ;;  %v1377_v13 = vunpack.i.l.bf16 %v1376_v11 }
 0x17c   : > { %v672_v14 = vpop.permute.xlu0 %671 }
 0x17d   : > { %v696_v10 = vsel %vm278_vm1, %v1704_v19, %v1377_v13  ;;  %v697_v15 = vsel %vm278_vm1, %v1707_v24, %v1378_v12  ;;  %v698_v16 = vsel %vm278_vm1, %v1710_v27, %v672_v14 }
 0x17e   : > { %v709_v17 = vmax.f32 %v696_v10, 0.0  ;;  %v710_v18 = vmax.f32 %v697_v15, 0.0  ;;  %v711_v20 = vmax.f32 %v698_v16, 0.0 }
 0x17f   : > { %785 = sbr.rel (!%p1524_p4) target bundleno = 450 (0x1c2), region = 40 }
 0x180   : > { %v1124_v21 = vpack.c.bf16 %v709_v17, %v709_v17  ;;  %v1125_v22 = vpack.c.bf16 %v710_v18, %v710_v18  ;;  %v1126_v23 = vpack.c.bf16 %v711_v20, %v711_v20 }
 0x182   : > { %776 = vst.msk [vmem:[%s1717_s7 + $0x28] sm:$0xf] %vm765_vm2, %v1124_v21  ;;  %777 = vst.msk [vmem:[%s1717_s7 + $0x2c] sm:$0xf] %vm765_vm2, %v1125_v22 }
 0x183   : > { %778 = vst.msk [vmem:[%s1717_s7 + $0x30] sm:$0xf] %vm765_vm2, %v1126_v23 }
 0x184   : > { %s1857_s15 = smov (!%p788_p8, %s787_s15), 13 }
 0x185   : > { %s1102_s12 = sshll.u32 %s1857_s15, 6 }
 0x186   : > { %p1105_p9 = scmp.eq.s32.totalorder %s1102_s12, 0 }
 0x187   : > { %1379 = sdivrem.u32 (!%p1105_p9), %s1857_s15, 13 }
 0x188   : > { %796 = sbr.rel (%p1105_p9) target bundleno = 450 (0x1c2), region = 44 }
 0x190   : > { %s1780_s23 = spop.drf %1379 }
 0x191   : > { %p1106_p10 = scmp.le.s32.totalorder %s1780_s23, 0 }
 0x192   : > { %s1850_s18 = smov (!%p1106_p10), %s1774_s11  ;;  %s1851_s26 = smov (!%p1106_p10), %s1717_s7 }
 0x193   : > { %1007 = sbr.rel (%p1106_p10) target bundleno = 425 (0x1a9), region = 119  ;;  %s1789_s13 = smov (!%p1106_p10), 0  }
 0x194   : > { %s1791_s14 = smov (!%p1106_p10), 0  }
 0x198 LB: >> { %v814_v19 = vld [vmem:[%s1445_s26] sm:$0xf]  ;;  %v816_v24 = vld [vmem:[%s1445_s26 + $0x4] sm:$0xf]  ;;  %v818_v25 = vld [vmem:[%s1445_s26 + $0x8] sm:$0xf]  ;;  %s1453_s14 = sphi %s1791_s14, %s808_s14   ;;  %s1449_s13 = sphi %s1789_s13, %s1852_s13   ;;  %s1445_s26 = sphi %s1851_s26, %s845_s26   ;;  %s1441_s18 = sphi %s1850_s18, %s846_s18  }
 0x199   : >> { %815 = vst [vmem:[%s1441_s18] sm:$0xf] %v814_v19  ;;  %817 = vst [vmem:[%s1441_s18 + $0x4] sm:$0xf] %v816_v24  ;;  %v820_v26 = vld [vmem:[%s1445_s26 + $0xc] sm:$0xf]  ;;  %s840_s17 = sadd.s32 1, %s1449_s13 }
 0x19a   : >> { %819 = vst [vmem:[%s1441_s18 + $0x8] sm:$0xf] %v818_v25  ;;  %v822_v27 = vld [vmem:[%s1445_s26 + $0x10] sm:$0xf]  ;;  %v824_v28 = vld [vmem:[%s1445_s26 + $0x14] sm:$0xf]  ;;  %p841_p11 = scmp.ge.s32.totalorder %s840_s17, %s1780_s23 }
 0x19b   : >> { %821 = vst [vmem:[%s1441_s18 + $0xc] sm:$0xf] %v820_v26  ;;  %823 = vst [vmem:[%s1441_s18 + $0x10] sm:$0xf] %v822_v27  ;;  %v826_v29 = vld [vmem:[%s1445_s26 + $0x18] sm:$0xf] }
 0x19c   : >> { %825 = vst [vmem:[%s1441_s18 + $0x14] sm:$0xf] %v824_v28  ;;  %v828_v30 = vld [vmem:[%s1445_s26 + $0x1c] sm:$0xf]  ;;  %v830_v31 = vld [vmem:[%s1445_s26 + $0x20] sm:$0xf] }
 0x19d   : >> { %827 = vst [vmem:[%s1441_s18 + $0x18] sm:$0xf] %v826_v29  ;;  %829 = vst [vmem:[%s1441_s18 + $0x1c] sm:$0xf] %v828_v30  ;;  %v832_v32 = vld [vmem:[%s1445_s26 + $0x24] sm:$0xf] }
 0x19e   : >> { %831 = vst [vmem:[%s1441_s18 + $0x20] sm:$0xf] %v830_v31  ;;  %v834_v33 = vld [vmem:[%s1445_s26 + $0x28] sm:$0xf]  ;;  %v836_v34 = vld [vmem:[%s1445_s26 + $0x2c] sm:$0xf] }
 0x19f   : >> { %833 = vst [vmem:[%s1441_s18 + $0x24] sm:$0xf] %v832_v32  ;;  %835 = vst [vmem:[%s1441_s18 + $0x28] sm:$0xf] %v834_v33  ;;  %v838_v35 = vld [vmem:[%s1445_s26 + $0x30] sm:$0xf] }
 0x1a0   : >> { %837 = vst [vmem:[%s1441_s18 + $0x2c] sm:$0xf] %v836_v34  ;;  %839 = vst [vmem:[%s1441_s18 + $0x30] sm:$0xf] %v838_v35  ;;  %s1859_s17 = smov (%p841_p11, %s840_s17), 0  ;;  %s808_s14 = sadd.s32 1, %s1453_s14  }
 0x1a1   : >> { %s843_s20 = smul.u32 52, %s1859_s17  ;;  %p807_p12 = scmp.ge.s32.totalorder %s808_s14, %s1780_s23 }
 0x1a2   : >> { %s1852_s13 = smov %s1859_s17 }
 0x1a3   : >> { %s845_s26 = scalar_lea.vmem %s1717_s7, %s843_s20 [#allocation2]   ;;  %s846_s18 = scalar_lea.vmem %s1774_s11, %s843_s20  }
 0x1a4   : > { %810 = sbr.rel (!%p807_p12) target bundleno = 408 (0x198), region = 125 }
 0x1a9 PF: > { %1381 = sdivrem.u32 %s1857_s15, 13 }
 0x1aa   : > { %s1107_s21 = smul.u32 52, %s1780_s23 }
 0x1ac   : > { %s851_s24 = scalar_lea.vmem %s1717_s7, %s1107_s21 [#allocation2]   ;;  %s853_s25 = scalar_lea.vmem %s1774_s11, %s1107_s21  }
 0x1b2   : > { %s1382_s27 = spop.drf %1381 }
 0x1b3   : > { %p1109_p13 = scmp.le.s32.totalorder %s1382_s27, 0 }
 0x1b4   : > { %s1455_s28 = smov (!%p1109_p13), %s853_s25   ;;  %s1459_s29 = smov (!%p1109_p13), %s851_s24  }
 0x1b5   : > { %1021 = sbr.rel (%p1109_p13) target bundleno = 450 (0x1c2), region = 130  ;;  %s1463_s30 = smov (!%p1109_p13), 0  }
 0x1b6   : > { %s1467_s5 = smov (!%p1109_p13), 0  }
 0x1ba LB: >> { %v863_v36 = vld [vmem:[%s1461_s29] sm:$0xf]  ;;  %s865_s6 = sadd.s32 1, %s1465_s30  ;;  %s857_s5 = sadd.s32 1, %s1469_s5   ;;  %s1469_s5 = sphi %s1467_s5, %s857_s5   ;;  %s1465_s30 = sphi %s1463_s30, %s1464_s30   ;;  %s1461_s29 = sphi %s1459_s29, %s870_s29   ;;  %s1457_s28 = sphi %s1455_s28, %s871_s28  }
 0x1bb   : >> { %864 = vst [vmem:[%s1457_s28] sm:$0xf] %v863_v36  ;;  %p866_p0 = scmp.ge.s32.totalorder %s865_s6, %s1382_s27  ;;  %p856_p1 = scmp.ge.s32.totalorder %s857_s5, %s1382_s27 }
 0x1bd   : >> { %s1861_s6 = smov (%p866_p0, %s865_s6), 0  ;;  %859 = sbr.rel (!%p856_p1) target bundleno = 442 (0x1ba), region = 136 }
 0x1be   : >> { %s1110_s7 = sshll.u32 %s1861_s6, 2  ;;  %s1464_s30 = smov %s1861_s6  }
 0x1bf   : >> { %s870_s29 = scalar_lea.vmem %s851_s24, %s1110_s7 [#allocation2]   ;;  %s871_s28 = scalar_lea.vmem %s853_s25, %s1110_s7  }
 0x1c2 PF: > { %p11_p2 = scmp.ge.s32.totalorder %s1514_s19, 4   ;;  %s1853_s15 = smov %s1433_s16 }
 0x1c3   : > { %s1854_s16 = smov %s1522_s22  ;;  %s1855_s17 = smov %s1514_s19 }
 0x1c4   :  { %13 = sbr.rel (!%p11_p2) target bundleno = 2 (0x2), region = 147 }

</bundles_post_ra>
